<compile_context>
chip_gen: v7x
topology: tpu7x:2x2x1
jax: 0.10.0
libtpu: 0.0.40
codegen_flags: <defaults>
</compile_context>

<pallas_src>
import math
import functools

import jax
import jax.numpy as jnp
import numpy as np
from jax.experimental import pallas as pl
from jax.experimental.pallas import tpu as pltpu


# ------------------------------------------------------------------ kernel ---

def _layernorm(x, w, b, eps=1e-5):
    mu = jnp.mean(x, axis=-1, keepdims=True)
    xc = x - mu
    var = jnp.mean(xc * xc, axis=-1, keepdims=True)
    inv = jax.lax.rsqrt(var + eps)
    return xc * inv * w + b


def _gelu_exact(x):
    # nn.GELU() default: exact erf-based GELU
    return 0.5 * x * (1.0 + jax.lax.erf(x * (1.0 / math.sqrt(2.0))))


def _lma_block_kernel(num_heads,
                      z_ref,
                      ln1w_ref, ln1b_ref,
                      wqkv_ref, bqkv_ref,
                      wproj_ref, bproj_ref,
                      ln2w_ref, ln2b_ref,
                      wfc_ref, bfc_ref,
                      wmlp_ref, bmlp_ref,
                      out_ref):
    Bb, L, D = z_ref.shape
    hd = D // num_heads
    R = Bb * L

    # (Bb, L, D) -> (Bb*L, D): free sublane merge (L == 8), gives MXU many rows.
    z = z_ref[...].reshape(R, D)

    # ---- attention branch --------------------------------------------------
    h1 = _layernorm(z, ln1w_ref[0], ln1b_ref[0])

    # Single fused QKV matmul (bf16 operands, f32 accumulation).  The 1/sqrt(hd)
    # attention scale was folded into the q columns of wqkv/bqkv host-side.
    qkv = jnp.dot(h1.astype(jnp.bfloat16), wqkv_ref[...],
                  preferred_element_type=jnp.float32) + bqkv_ref[...]

    # Per-head attention (no matmuls in this loop; only tiny LxL einsums,
    # batched over the folded batch dim).  num_heads is small -> static unroll.
    ys = []
    for h in range(num_heads):
        q = qkv[:, 0 * D + h * hd: 0 * D + (h + 1) * hd].reshape(Bb, L, hd)
        k = qkv[:, 1 * D + h * hd: 1 * D + (h + 1) * hd].reshape(Bb, L, hd)
        v = qkv[:, 2 * D + h * hd: 2 * D + (h + 1) * hd].reshape(Bb, L, hd)

        s = jnp.einsum('bld,bmd->blm',
                       q.astype(jnp.bfloat16), k.astype(jnp.bfloat16),
                       preferred_element_type=jnp.float32)
        s = s - jnp.max(s, axis=-1, keepdims=True)
        p = jnp.exp(s)
        p = p * pl.reciprocal(jnp.sum(p, axis=-1, keepdims=True), approx=True)
        y = jnp.einsum('blm,bmd->bld',
                       p.astype(jnp.bfloat16), v.astype(jnp.bfloat16),
                       preferred_element_type=jnp.float32)
        ys.append(y.reshape(R, hd))

    # Re-concatenate heads along lanes, then ONE full-width output projection.
    y = jnp.concatenate(ys, axis=-1)                        # (R, D) f32
    attn = jnp.dot(y.astype(jnp.bfloat16), wproj_ref[...],
                   preferred_element_type=jnp.float32) + bproj_ref[...]
    z1 = z + attn

    # ---- MLP branch --------------------------------------------------------
    h2 = _layernorm(z1, ln2w_ref[0], ln2b_ref[0])
    m = jnp.dot(h2.astype(jnp.bfloat16), wfc_ref[...],
                preferred_element_type=jnp.float32) + bfc_ref[...]
    m = _gelu_exact(m)
    m = jnp.dot(m.astype(jnp.bfloat16), wmlp_ref[...],
                preferred_element_type=jnp.float32) + bmlp_ref[...]

    out_ref[...] = (z1 + m).reshape(Bb, L, D).astype(out_ref.dtype)


# ----------------------------------------------------------------- wrapper ---

def lma_block_pallas(z, params, num_heads, batch_block=None):
    B, L, D = z.shape
    H = params["w_fc"].shape[1]
    assert D % num_heads == 0
    hd = D // num_heads

    # ---- host-side weight prep (cheap; fused into the jit of this wrapper) --
    # Fold the 1/sqrt(head_dim) attention scale into the q columns of the fused
    # QKV weight/bias, and pre-cast matmul weights to bf16 (MXU-native; halves
    # weight DMA/VMEM bytes).  Biases / LN params stay f32.
    scale = 1.0 / math.sqrt(hd)
    col_scale = jnp.concatenate(
        [jnp.full((D,), scale, jnp.float32), jnp.ones((2 * D,), jnp.float32)])
    w_qkv = (params["w_qkv"] * col_scale).astype(jnp.bfloat16)      # (D, 3D)
    b_qkv = params["b_qkv"] * col_scale                              # (1, 3D) f32
    w_attn_proj = params["w_attn_proj"].astype(jnp.bfloat16)         # (D, D)
    w_fc = params["w_fc"].astype(jnp.bfloat16)                       # (D, H)
    w_mlp_proj = params["w_mlp_proj"].astype(jnp.bfloat16)           # (H, D)

    # ---- batch-block selection ----------------------------------------------
    # Target ~512 rows (bb*L) per block so matmuls fill the MXU and the ~0.35us
    # per-grid-step overhead amortizes, but keep >= 2 grid steps when B > 1 so
    # both v7x TensorCores get work ("parallel" grid axis).  bb must divide B.
    if batch_block is None:
        target_rows = 512
        cap = max(1, target_rows // max(L, 1))
        if B > 1:
            cap = min(cap, B // 2)
        bb = 1
        for d in range(1, min(cap, B) + 1):
            if B % d == 0:
                bb = d
    else:
        bb = int(batch_block)
        if bb <= 0 or B % bb != 0:
            raise ValueError(
                f"batch_block ({batch_block}) must be a positive divisor of B ({B})")
    num_blocks = B // bb

    def full_spec(shape):
        return pl.BlockSpec(shape, lambda b: (0,) * len(shape))

    in_specs = [
        pl.BlockSpec((bb, L, D), lambda b: (b, 0, 0)),   # z
        full_spec((1, D)), full_spec((1, D)),            # ln1 w, b
        full_spec((D, 3 * D)),                           # fused QKV W (bf16, q-scaled)
        full_spec((1, 3 * D)),                           # fused QKV bias (q-scaled)
        full_spec((D, D)),                               # attn c_proj W (bf16)
        full_spec((1, D)),                               # attn c_proj bias
        full_spec((1, D)), full_spec((1, D)),            # ln2 w, b
        full_spec((D, H)), full_spec((1, H)),            # mlp c_fc W (bf16), b
        full_spec((H, D)), full_spec((1, D)),            # mlp c_proj W (bf16), b
    ]

    return pl.pallas_call(
        functools.partial(_lma_block_kernel, num_heads),
        out_shape=jax.ShapeDtypeStruct((B, L, D), z.dtype),
        grid=(num_blocks,),
        in_specs=in_specs,
        out_specs=pl.BlockSpec((bb, L, D), lambda b: (b, 0, 0)),
        compiler_params=pltpu.CompilerParams(
            dimension_semantics=("parallel",),
            vmem_limit_bytes=32 * 1024 * 1024),
    )(
        z,
        params["ln1_w"], params["ln1_b"],
        w_qkv, b_qkv,
        w_attn_proj, params["b_attn_proj"],
        params["ln2_w"], params["ln2_b"],
        w_fc, params["b_fc"],
        w_mlp_proj, params["b_mlp_proj"],
    )


# --------------------------------------------------------- pure-JAX reference

def lma_block_ref(z, params, num_heads):
    B, L, D = z.shape
    hd = D // num_heads

    def ln(x, w, b):
        mu = jnp.mean(x, -1, keepdims=True)
        xc = x - mu
        var = jnp.mean(xc * xc, -1, keepdims=True)
        return xc * jax.lax.rsqrt(var + 1e-5) * w[0] + b[0]

    h1 = ln(z, params["ln1_w"], params["ln1_b"])
    qkv = h1 @ params["w_qkv"] + params["b_qkv"][0]
    q, k, v = jnp.split(qkv, 3, axis=-1)
    q = q.reshape(B, L, num_heads, hd).transpose(0, 2, 1, 3)
    k = k.reshape(B, L, num_heads, hd).transpose(0, 2, 1, 3)
    v = v.reshape(B, L, num_heads, hd).transpose(0, 2, 1, 3)
    att = (q @ jnp.swapaxes(k, -2, -1)) / math.sqrt(hd)
    att = jax.nn.softmax(att, axis=-1)
    y = (att @ v).transpose(0, 2, 1, 3).reshape(B, L, D)
    y = y @ params["w_attn_proj"] + params["b_attn_proj"][0]
    z1 = z + y

    h2 = ln(z1, params["ln2_w"], params["ln2_b"])
    m = h2 @ params["w_fc"] + params["b_fc"][0]
    m = 0.5 * m * (1.0 + jax.lax.erf(m / math.sqrt(2.0)))
    m = m @ params["w_mlp_proj"] + params["b_mlp_proj"][0]
    return z1 + m


# -------------------------------------------------------------------- main ---

if __name__ == "__main__":
    # LMAConfigRL-consistent small shapes:
    #   seq_len=8, embed_dim=32 -> total_features=256, target_l_new=8 -> L_new=8, C_new=32
    #   d_new=32, num_heads_latent=4, ff_latent_hidden=64, dropout=0.0, bias=True
    B, L_new, d_new = 2, 8, 32
    num_heads_latent = 4
    ff_latent_hidden = 64

    key = jax.random.PRNGKey(0)
    keys = jax.random.split(key, 12)

    def w(k, shape, scale=0.1):
        return (scale * jax.random.normal(k, shape)).astype(jnp.float32)

    params = {
        "ln1_w": jnp.ones((1, d_new), jnp.float32),
        "ln1_b": jnp.zeros((1, d_new), jnp.float32),
        # linear weights stored pre-transposed (in, out): y = x @ W + b
        "w_qkv": w(keys[0], (d_new, 3 * d_new)),
        "b_qkv": w(keys[1], (1, 3 * d_new)),
        "w_attn_proj": w(keys[2], (d_new, d_new)),
        "b_attn_proj": w(keys[3], (1, d_new)),
        "ln2_w": jnp.ones((1, d_new), jnp.float32),
        "ln2_b": jnp.zeros((1, d_new), jnp.float32),
        "w_fc": w(keys[4], (d_new, ff_latent_hidden)),
        "b_fc": w(keys[5], (1, ff_latent_hidden)),
        "w_mlp_proj": w(keys[6], (ff_latent_hidden, d_new)),
        "b_mlp_proj": w(keys[7], (1, d_new)),
    }

    z = jax.random.normal(keys[8], (B, L_new, d_new), dtype=jnp.float32)

    fwd = jax.jit(functools.partial(lma_block_pallas, num_heads=num_heads_latent))
    out = jax.block_until_ready(fwd(z, params))

    ref = jax.block_until_ready(lma_block_ref(z, params, num_heads_latent))
    assert out.shape == (B, L_new, d_new)
    # bf16 MXU operands (f32 accumulation) vs the f32 reference -> loose tolerance.
    assert np.allclose(np.asarray(out), np.asarray(ref), atol=2e-2, rtol=2e-2)

    print("KERNEL_OK")
</pallas_src>

<mosaic_0001>
module attributes {stable_mosaic.version = 11 : i64} {
  func.func @_lma_block_kernel(%arg0: i32, %arg1: memref<1x8x32xf32, #tpu.memory_space<vmem>>, %arg2: memref<1x32xf32, #tpu.memory_space<vmem>>, %arg3: memref<1x32xf32, #tpu.memory_space<vmem>>, %arg4: memref<32x96xbf16, #tpu.memory_space<vmem>>, %arg5: memref<1x96xf32, #tpu.memory_space<vmem>>, %arg6: memref<32x32xbf16, #tpu.memory_space<vmem>>, %arg7: memref<1x32xf32, #tpu.memory_space<vmem>>, %arg8: memref<1x32xf32, #tpu.memory_space<vmem>>, %arg9: memref<1x32xf32, #tpu.memory_space<vmem>>, %arg10: memref<32x64xbf16, #tpu.memory_space<vmem>>, %arg11: memref<1x64xf32, #tpu.memory_space<vmem>>, %arg12: memref<64x32xbf16, #tpu.memory_space<vmem>>, %arg13: memref<1x32xf32, #tpu.memory_space<vmem>>, %arg14: memref<1x8x32xf32, #tpu.memory_space<vmem>>) attributes {dimension_semantics = [#tpu.dimension_semantics<parallel>], iteration_bounds = array<i64: 2>, scalar_prefetch = 0 : i64, scratch_operands = 0 : i64, tpu.core_type = #tpu.core_type<tc>, window_params = [{transform_indices = @transform_0, window_bounds = array<i64: 1, 8, 32>}, {pipeline_mode = #tpu.pipeline_mode<synchronous>, transform_indices = @transform_1, window_bounds = array<i64: 1, 32>}, {pipeline_mode = #tpu.pipeline_mode<synchronous>, transform_indices = @transform_2, window_bounds = array<i64: 1, 32>}, {pipeline_mode = #tpu.pipeline_mode<synchronous>, transform_indices = @transform_3, window_bounds = array<i64: 32, 96>}, {pipeline_mode = #tpu.pipeline_mode<synchronous>, transform_indices = @transform_4, window_bounds = array<i64: 1, 96>}, {pipeline_mode = #tpu.pipeline_mode<synchronous>, transform_indices = @transform_5, window_bounds = array<i64: 32, 32>}, {pipeline_mode = #tpu.pipeline_mode<synchronous>, transform_indices = @transform_6, window_bounds = array<i64: 1, 32>}, {pipeline_mode = #tpu.pipeline_mode<synchronous>, transform_indices = @transform_7, window_bounds = array<i64: 1, 32>}, {pipeline_mode = #tpu.pipeline_mode<synchronous>, transform_indices = @transform_8, window_bounds = array<i64: 1, 32>}, {pipeline_mode = #tpu.pipeline_mode<synchronous>, transform_indices = @transform_9, window_bounds = array<i64: 32, 64>}, {pipeline_mode = #tpu.pipeline_mode<synchronous>, transform_indices = @transform_10, window_bounds = array<i64: 1, 64>}, {pipeline_mode = #tpu.pipeline_mode<synchronous>, transform_indices = @transform_11, window_bounds = array<i64: 64, 32>}, {pipeline_mode = #tpu.pipeline_mode<synchronous>, transform_indices = @transform_12, window_bounds = array<i64: 1, 32>}, {transform_indices = @transform_13, window_bounds = array<i64: 1, 8, 32>}]} {
    %c0 = arith.constant 0 : index
    %c0_0 = arith.constant 0 : index
    %c0_1 = arith.constant 0 : index
    %0 = vector.load %arg1[%c0, %c0_0, %c0_1] : memref<1x8x32xf32, #tpu.memory_space<vmem>>, vector<1x8x32xf32>
    %1 = vector.shape_cast %0 : vector<1x8x32xf32> to vector<8x32xf32>
    %c0_2 = arith.constant 0 : index
    %c0_3 = arith.constant 0 : index
    %2 = vector.load %arg2[%c0_2, %c0_3] : memref<1x32xf32, #tpu.memory_space<vmem>>, vector<1x32xf32>
    %3 = vector.shape_cast %2 : vector<1x32xf32> to vector<32xf32>
    %c0_4 = arith.constant 0 : index
    %c0_5 = arith.constant 0 : index
    %4 = vector.load %arg3[%c0_4, %c0_5] : memref<1x32xf32, #tpu.memory_space<vmem>>, vector<1x32xf32>
    %5 = vector.shape_cast %4 : vector<1x32xf32> to vector<32xf32>
    %cst = arith.constant dense<0.000000e+00> : vector<8xf32>
    %6 = vector.multi_reduction <add>, %1, %cst [1] : vector<8x32xf32> to vector<8xf32>
    %7 = vector.shape_cast %6 : vector<8xf32> to vector<8x1xf32>
    %cst_6 = arith.constant 3.200000e+01 : f32
    %8 = vector.broadcast %cst_6 : f32 to vector<8x1xf32>
    %9 = arith.divf %7, %8 : vector<8x1xf32>
    %10 = vector.broadcast %9 : vector<8x1xf32> to vector<8x32xf32>
    %11 = arith.subf %1, %10 : vector<8x32xf32>
    %12 = arith.mulf %11, %11 : vector<8x32xf32>
    %cst_7 = arith.constant dense<0.000000e+00> : vector<8xf32>
    %13 = vector.multi_reduction <add>, %12, %cst_7 [1] : vector<8x32xf32> to vector<8xf32>
    %14 = vector.shape_cast %13 : vector<8xf32> to vector<8x1xf32>
    %cst_8 = arith.constant 3.200000e+01 : f32
    %15 = vector.broadcast %cst_8 : f32 to vector<8x1xf32>
    %16 = arith.divf %14, %15 : vector<8x1xf32>
    %cst_9 = arith.constant 9.99999974E-6 : f32
    %17 = vector.broadcast %cst_9 : f32 to vector<8x1xf32>
    %18 = arith.addf %16, %17 : vector<8x1xf32>
    %19 = math.rsqrt %18 : vector<8x1xf32>
    %20 = vector.broadcast %19 : vector<8x1xf32> to vector<8x32xf32>
    %21 = arith.mulf %11, %20 : vector<8x32xf32>
    %22 = vector.shape_cast %3 : vector<32xf32> to vector<1x32xf32>
    %23 = vector.broadcast %22 : vector<1x32xf32> to vector<8x32xf32>
    %24 = arith.mulf %21, %23 : vector<8x32xf32>
    %25 = vector.shape_cast %5 : vector<32xf32> to vector<1x32xf32>
    %26 = vector.broadcast %25 : vector<1x32xf32> to vector<8x32xf32>
    %27 = arith.addf %24, %26 : vector<8x32xf32>
    %28 = arith.truncf %27 : vector<8x32xf32> to vector<8x32xbf16>
    %c0_10 = arith.constant 0 : index
    %c0_11 = arith.constant 0 : index
    %29 = vector.load %arg4[%c0_10, %c0_11] : memref<32x96xbf16, #tpu.memory_space<vmem>>, vector<32x96xbf16>
    %cst_12 = arith.constant dense<0.000000e+00> : vector<8x96xf32>
    %30 = tpu.matmul %28, %29, %cst_12 {dimension_numbers = #tpu.dot_dimension_numbers<[1], [0], [0], [1], [0, 0, 1, 1], [], []>} : vector<8x32xbf16>, vector<32x96xbf16>, vector<8x96xf32> -> vector<8x96xf32>
    %c0_13 = arith.constant 0 : index
    %c0_14 = arith.constant 0 : index
    %31 = vector.load %arg5[%c0_13, %c0_14] : memref<1x96xf32, #tpu.memory_space<vmem>>, vector<1x96xf32>
    %32 = vector.broadcast %31 : vector<1x96xf32> to vector<8x96xf32>
    %33 = arith.addf %30, %32 : vector<8x96xf32>
    %34 = vector.extract_strided_slice %33 {offsets = [0, 0], sizes = [8, 8], strides = [1, 1]} : vector<8x96xf32> to vector<8x8xf32>
    %35 = vector.shape_cast %34 : vector<8x8xf32> to vector<1x8x8xf32>
    %36 = vector.extract_strided_slice %33 {offsets = [0, 32], sizes = [8, 8], strides = [1, 1]} : vector<8x96xf32> to vector<8x8xf32>
    %37 = vector.shape_cast %36 : vector<8x8xf32> to vector<1x8x8xf32>
    %38 = vector.extract_strided_slice %33 {offsets = [0, 64], sizes = [8, 8], strides = [1, 1]} : vector<8x96xf32> to vector<8x8xf32>
    %39 = vector.shape_cast %38 : vector<8x8xf32> to vector<1x8x8xf32>
    %40 = arith.truncf %35 : vector<1x8x8xf32> to vector<1x8x8xbf16>
    %41 = arith.truncf %37 : vector<1x8x8xf32> to vector<1x8x8xbf16>
    "tpu.trace_start"() <{level = 10 : i32, message = "bld,bmd->blm"}> : () -> ()
    %cst_15 = arith.constant dense<0.000000e+00> : vector<1x8x8xf32>
    %42 = tpu.matmul %40, %41, %cst_15 {dimension_numbers = #tpu.dot_dimension_numbers<[2], [2], [1], [1], [0, 0, 0, 1, 1, 1], [0], [0]>} : vector<1x8x8xbf16>, vector<1x8x8xbf16>, vector<1x8x8xf32> -> vector<1x8x8xf32>
    "tpu.trace_stop"() : () -> ()
    %cst_16 = arith.constant dense<0xFF800000> : vector<1x8xf32>
    %43 = vector.multi_reduction <maximumf>, %42, %cst_16 [2] : vector<1x8x8xf32> to vector<1x8xf32>
    %44 = vector.shape_cast %43 : vector<1x8xf32> to vector<1x8x1xf32>
    %45 = vector.broadcast %44 : vector<1x8x1xf32> to vector<1x8x8xf32>
    %46 = arith.subf %42, %45 : vector<1x8x8xf32>
    %47 = math.exp %46 : vector<1x8x8xf32>
    %cst_17 = arith.constant dense<0.000000e+00> : vector<1x8xf32>
    %48 = vector.multi_reduction <add>, %47, %cst_17 [2] : vector<1x8x8xf32> to vector<1x8xf32>
    %49 = vector.shape_cast %48 : vector<1x8xf32> to vector<1x8x1xf32>
    %50 = tpu.reciprocal %49 {approx = true} : vector<1x8x1xf32> -> vector<1x8x1xf32>
    %51 = vector.broadcast %50 : vector<1x8x1xf32> to vector<1x8x8xf32>
    %52 = arith.mulf %47, %51 : vector<1x8x8xf32>
    %53 = arith.truncf %52 : vector<1x8x8xf32> to vector<1x8x8xbf16>
    %54 = arith.truncf %39 : vector<1x8x8xf32> to vector<1x8x8xbf16>
    "tpu.trace_start"() <{level = 10 : i32, message = "blm,bmd->bld"}> : () -> ()
    %cst_18 = arith.constant dense<0.000000e+00> : vector<1x8x8xf32>
    %55 = tpu.matmul %53, %54, %cst_18 {dimension_numbers = #tpu.dot_dimension_numbers<[2], [1], [1], [2], [0, 0, 0, 1, 1, 2], [0], [0]>} : vector<1x8x8xbf16>, vector<1x8x8xbf16>, vector<1x8x8xf32> -> vector<1x8x8xf32>
    "tpu.trace_stop"() : () -> ()
    %56 = vector.shape_cast %55 : vector<1x8x8xf32> to vector<8x8xf32>
    %57 = vector.extract_strided_slice %33 {offsets = [0, 8], sizes = [8, 8], strides = [1, 1]} : vector<8x96xf32> to vector<8x8xf32>
    %58 = vector.shape_cast %57 : vector<8x8xf32> to vector<1x8x8xf32>
    %59 = vector.extract_strided_slice %33 {offsets = [0, 40], sizes = [8, 8], strides = [1, 1]} : vector<8x96xf32> to vector<8x8xf32>
    %60 = vector.shape_cast %59 : vector<8x8xf32> to vector<1x8x8xf32>
    %61 = vector.extract_strided_slice %33 {offsets = [0, 72], sizes = [8, 8], strides = [1, 1]} : vector<8x96xf32> to vector<8x8xf32>
    %62 = vector.shape_cast %61 : vector<8x8xf32> to vector<1x8x8xf32>
    %63 = arith.truncf %58 : vector<1x8x8xf32> to vector<1x8x8xbf16>
    %64 = arith.truncf %60 : vector<1x8x8xf32> to vector<1x8x8xbf16>
    "tpu.trace_start"() <{level = 10 : i32, message = "bld,bmd->blm"}> : () -> ()
    %cst_19 = arith.constant dense<0.000000e+00> : vector<1x8x8xf32>
    %65 = tpu.matmul %63, %64, %cst_19 {dimension_numbers = #tpu.dot_dimension_numbers<[2], [2], [1], [1], [0, 0, 0, 1, 1, 1], [0], [0]>} : vector<1x8x8xbf16>, vector<1x8x8xbf16>, vector<1x8x8xf32> -> vector<1x8x8xf32>
    "tpu.trace_stop"() : () -> ()
    %cst_20 = arith.constant dense<0xFF800000> : vector<1x8xf32>
    %66 = vector.multi_reduction <maximumf>, %65, %cst_20 [2] : vector<1x8x8xf32> to vector<1x8xf32>
    %67 = vector.shape_cast %66 : vector<1x8xf32> to vector<1x8x1xf32>
    %68 = vector.broadcast %67 : vector<1x8x1xf32> to vector<1x8x8xf32>
    %69 = arith.subf %65, %68 : vector<1x8x8xf32>
    %70 = math.exp %69 : vector<1x8x8xf32>
    %cst_21 = arith.constant dense<0.000000e+00> : vector<1x8xf32>
    %71 = vector.multi_reduction <add>, %70, %cst_21 [2] : vector<1x8x8xf32> to vector<1x8xf32>
    %72 = vector.shape_cast %71 : vector<1x8xf32> to vector<1x8x1xf32>
    %73 = tpu.reciprocal %72 {approx = true} : vector<1x8x1xf32> -> vector<1x8x1xf32>
    %74 = vector.broadcast %73 : vector<1x8x1xf32> to vector<1x8x8xf32>
    %75 = arith.mulf %70, %74 : vector<1x8x8xf32>
    %76 = arith.truncf %75 : vector<1x8x8xf32> to vector<1x8x8xbf16>
    %77 = arith.truncf %62 : vector<1x8x8xf32> to vector<1x8x8xbf16>
    "tpu.trace_start"() <{level = 10 : i32, message = "blm,bmd->bld"}> : () -> ()
    %cst_22 = arith.constant dense<0.000000e+00> : vector<1x8x8xf32>
    %78 = tpu.matmul %76, %77, %cst_22 {dimension_numbers = #tpu.dot_dimension_numbers<[2], [1], [1], [2], [0, 0, 0, 1, 1, 2], [0], [0]>} : vector<1x8x8xbf16>, vector<1x8x8xbf16>, vector<1x8x8xf32> -> vector<1x8x8xf32>
    "tpu.trace_stop"() : () -> ()
    %79 = vector.shape_cast %78 : vector<1x8x8xf32> to vector<8x8xf32>
    %80 = vector.extract_strided_slice %33 {offsets = [0, 16], sizes = [8, 8], strides = [1, 1]} : vector<8x96xf32> to vector<8x8xf32>
    %81 = vector.shape_cast %80 : vector<8x8xf32> to vector<1x8x8xf32>
    %82 = vector.extract_strided_slice %33 {offsets = [0, 48], sizes = [8, 8], strides = [1, 1]} : vector<8x96xf32> to vector<8x8xf32>
    %83 = vector.shape_cast %82 : vector<8x8xf32> to vector<1x8x8xf32>
    %84 = vector.extract_strided_slice %33 {offsets = [0, 80], sizes = [8, 8], strides = [1, 1]} : vector<8x96xf32> to vector<8x8xf32>
    %85 = vector.shape_cast %84 : vector<8x8xf32> to vector<1x8x8xf32>
    %86 = arith.truncf %81 : vector<1x8x8xf32> to vector<1x8x8xbf16>
    %87 = arith.truncf %83 : vector<1x8x8xf32> to vector<1x8x8xbf16>
    "tpu.trace_start"() <{level = 10 : i32, message = "bld,bmd->blm"}> : () -> ()
    %cst_23 = arith.constant dense<0.000000e+00> : vector<1x8x8xf32>
    %88 = tpu.matmul %86, %87, %cst_23 {dimension_numbers = #tpu.dot_dimension_numbers<[2], [2], [1], [1], [0, 0, 0, 1, 1, 1], [0], [0]>} : vector<1x8x8xbf16>, vector<1x8x8xbf16>, vector<1x8x8xf32> -> vector<1x8x8xf32>
    "tpu.trace_stop"() : () -> ()
    %cst_24 = arith.constant dense<0xFF800000> : vector<1x8xf32>
    %89 = vector.multi_reduction <maximumf>, %88, %cst_24 [2] : vector<1x8x8xf32> to vector<1x8xf32>
    %90 = vector.shape_cast %89 : vector<1x8xf32> to vector<1x8x1xf32>
    %91 = vector.broadcast %90 : vector<1x8x1xf32> to vector<1x8x8xf32>
    %92 = arith.subf %88, %91 : vector<1x8x8xf32>
    %93 = math.exp %92 : vector<1x8x8xf32>
    %cst_25 = arith.constant dense<0.000000e+00> : vector<1x8xf32>
    %94 = vector.multi_reduction <add>, %93, %cst_25 [2] : vector<1x8x8xf32> to vector<1x8xf32>
    %95 = vector.shape_cast %94 : vector<1x8xf32> to vector<1x8x1xf32>
    %96 = tpu.reciprocal %95 {approx = true} : vector<1x8x1xf32> -> vector<1x8x1xf32>
    %97 = vector.broadcast %96 : vector<1x8x1xf32> to vector<1x8x8xf32>
    %98 = arith.mulf %93, %97 : vector<1x8x8xf32>
    %99 = arith.truncf %98 : vector<1x8x8xf32> to vector<1x8x8xbf16>
    %100 = arith.truncf %85 : vector<1x8x8xf32> to vector<1x8x8xbf16>
    "tpu.trace_start"() <{level = 10 : i32, message = "blm,bmd->bld"}> : () -> ()
    %cst_26 = arith.constant dense<0.000000e+00> : vector<1x8x8xf32>
    %101 = tpu.matmul %99, %100, %cst_26 {dimension_numbers = #tpu.dot_dimension_numbers<[2], [1], [1], [2], [0, 0, 0, 1, 1, 2], [0], [0]>} : vector<1x8x8xbf16>, vector<1x8x8xbf16>, vector<1x8x8xf32> -> vector<1x8x8xf32>
    "tpu.trace_stop"() : () -> ()
    %102 = vector.shape_cast %101 : vector<1x8x8xf32> to vector<8x8xf32>
    %103 = vector.extract_strided_slice %33 {offsets = [0, 24], sizes = [8, 8], strides = [1, 1]} : vector<8x96xf32> to vector<8x8xf32>
    %104 = vector.shape_cast %103 : vector<8x8xf32> to vector<1x8x8xf32>
    %105 = vector.extract_strided_slice %33 {offsets = [0, 56], sizes = [8, 8], strides = [1, 1]} : vector<8x96xf32> to vector<8x8xf32>
    %106 = vector.shape_cast %105 : vector<8x8xf32> to vector<1x8x8xf32>
    %107 = vector.extract_strided_slice %33 {offsets = [0, 88], sizes = [8, 8], strides = [1, 1]} : vector<8x96xf32> to vector<8x8xf32>
    %108 = vector.shape_cast %107 : vector<8x8xf32> to vector<1x8x8xf32>
    %109 = arith.truncf %104 : vector<1x8x8xf32> to vector<1x8x8xbf16>
    %110 = arith.truncf %106 : vector<1x8x8xf32> to vector<1x8x8xbf16>
    "tpu.trace_start"() <{level = 10 : i32, message = "bld,bmd->blm"}> : () -> ()
    %cst_27 = arith.constant dense<0.000000e+00> : vector<1x8x8xf32>
    %111 = tpu.matmul %109, %110, %cst_27 {dimension_numbers = #tpu.dot_dimension_numbers<[2], [2], [1], [1], [0, 0, 0, 1, 1, 1], [0], [0]>} : vector<1x8x8xbf16>, vector<1x8x8xbf16>, vector<1x8x8xf32> -> vector<1x8x8xf32>
    "tpu.trace_stop"() : () -> ()
    %cst_28 = arith.constant dense<0xFF800000> : vector<1x8xf32>
    %112 = vector.multi_reduction <maximumf>, %111, %cst_28 [2] : vector<1x8x8xf32> to vector<1x8xf32>
    %113 = vector.shape_cast %112 : vector<1x8xf32> to vector<1x8x1xf32>
    %114 = vector.broadcast %113 : vector<1x8x1xf32> to vector<1x8x8xf32>
    %115 = arith.subf %111, %114 : vector<1x8x8xf32>
    %116 = math.exp %115 : vector<1x8x8xf32>
    %cst_29 = arith.constant dense<0.000000e+00> : vector<1x8xf32>
    %117 = vector.multi_reduction <add>, %116, %cst_29 [2] : vector<1x8x8xf32> to vector<1x8xf32>
    %118 = vector.shape_cast %117 : vector<1x8xf32> to vector<1x8x1xf32>
    %119 = tpu.reciprocal %118 {approx = true} : vector<1x8x1xf32> -> vector<1x8x1xf32>
    %120 = vector.broadcast %119 : vector<1x8x1xf32> to vector<1x8x8xf32>
    %121 = arith.mulf %116, %120 : vector<1x8x8xf32>
    %122 = arith.truncf %121 : vector<1x8x8xf32> to vector<1x8x8xbf16>
    %123 = arith.truncf %108 : vector<1x8x8xf32> to vector<1x8x8xbf16>
    "tpu.trace_start"() <{level = 10 : i32, message = "blm,bmd->bld"}> : () -> ()
    %cst_30 = arith.constant dense<0.000000e+00> : vector<1x8x8xf32>
    %124 = tpu.matmul %122, %123, %cst_30 {dimension_numbers = #tpu.dot_dimension_numbers<[2], [1], [1], [2], [0, 0, 0, 1, 1, 2], [0], [0]>} : vector<1x8x8xbf16>, vector<1x8x8xbf16>, vector<1x8x8xf32> -> vector<1x8x8xf32>
    "tpu.trace_stop"() : () -> ()
    %125 = vector.shape_cast %124 : vector<1x8x8xf32> to vector<8x8xf32>
    %126 = tpu.concatenate %56, %79, %102, %125 in 1 : vector<8x8xf32>, vector<8x8xf32>, vector<8x8xf32>, vector<8x8xf32> -> vector<8x32xf32>
    %127 = arith.truncf %126 : vector<8x32xf32> to vector<8x32xbf16>
    %c0_31 = arith.constant 0 : index
    %c0_32 = arith.constant 0 : index
    %128 = vector.load %arg6[%c0_31, %c0_32] : memref<32x32xbf16, #tpu.memory_space<vmem>>, vector<32x32xbf16>
    %cst_33 = arith.constant dense<0.000000e+00> : vector<8x32xf32>
    %129 = tpu.matmul %127, %128, %cst_33 {dimension_numbers = #tpu.dot_dimension_numbers<[1], [0], [0], [1], [0, 0, 1, 1], [], []>} : vector<8x32xbf16>, vector<32x32xbf16>, vector<8x32xf32> -> vector<8x32xf32>
    %c0_34 = arith.constant 0 : index
    %c0_35 = arith.constant 0 : index
    %130 = vector.load %arg7[%c0_34, %c0_35] : memref<1x32xf32, #tpu.memory_space<vmem>>, vector<1x32xf32>
    %131 = vector.broadcast %130 : vector<1x32xf32> to vector<8x32xf32>
    %132 = arith.addf %129, %131 : vector<8x32xf32>
    %133 = arith.addf %1, %132 : vector<8x32xf32>
    %c0_36 = arith.constant 0 : index
    %c0_37 = arith.constant 0 : index
    %134 = vector.load %arg8[%c0_36, %c0_37] : memref<1x32xf32, #tpu.memory_space<vmem>>, vector<1x32xf32>
    %135 = vector.shape_cast %134 : vector<1x32xf32> to vector<32xf32>
    %c0_38 = arith.constant 0 : index
    %c0_39 = arith.constant 0 : index
    %136 = vector.load %arg9[%c0_38, %c0_39] : memref<1x32xf32, #tpu.memory_space<vmem>>, vector<1x32xf32>
    %137 = vector.shape_cast %136 : vector<1x32xf32> to vector<32xf32>
    %cst_40 = arith.constant dense<0.000000e+00> : vector<8xf32>
    %138 = vector.multi_reduction <add>, %133, %cst_40 [1] : vector<8x32xf32> to vector<8xf32>
    %139 = vector.shape_cast %138 : vector<8xf32> to vector<8x1xf32>
    %cst_41 = arith.constant 3.200000e+01 : f32
    %140 = vector.broadcast %cst_41 : f32 to vector<8x1xf32>
    %141 = arith.divf %139, %140 : vector<8x1xf32>
    %142 = vector.broadcast %141 : vector<8x1xf32> to vector<8x32xf32>
    %143 = arith.subf %133, %142 : vector<8x32xf32>
    %144 = arith.mulf %143, %143 : vector<8x32xf32>
    %cst_42 = arith.constant dense<0.000000e+00> : vector<8xf32>
    %145 = vector.multi_reduction <add>, %144, %cst_42 [1] : vector<8x32xf32> to vector<8xf32>
    %146 = vector.shape_cast %145 : vector<8xf32> to vector<8x1xf32>
    %cst_43 = arith.constant 3.200000e+01 : f32
    %147 = vector.broadcast %cst_43 : f32 to vector<8x1xf32>
    %148 = arith.divf %146, %147 : vector<8x1xf32>
    %cst_44 = arith.constant 9.99999974E-6 : f32
    %149 = vector.broadcast %cst_44 : f32 to vector<8x1xf32>
    %150 = arith.addf %148, %149 : vector<8x1xf32>
    %151 = math.rsqrt %150 : vector<8x1xf32>
    %152 = vector.broadcast %151 : vector<8x1xf32> to vector<8x32xf32>
    %153 = arith.mulf %143, %152 : vector<8x32xf32>
    %154 = vector.shape_cast %135 : vector<32xf32> to vector<1x32xf32>
    %155 = vector.broadcast %154 : vector<1x32xf32> to vector<8x32xf32>
    %156 = arith.mulf %153, %155 : vector<8x32xf32>
    %157 = vector.shape_cast %137 : vector<32xf32> to vector<1x32xf32>
    %158 = vector.broadcast %157 : vector<1x32xf32> to vector<8x32xf32>
    %159 = arith.addf %156, %158 : vector<8x32xf32>
    %160 = arith.truncf %159 : vector<8x32xf32> to vector<8x32xbf16>
    %c0_45 = arith.constant 0 : index
    %c0_46 = arith.constant 0 : index
    %161 = vector.load %arg10[%c0_45, %c0_46] : memref<32x64xbf16, #tpu.memory_space<vmem>>, vector<32x64xbf16>
    %cst_47 = arith.constant dense<0.000000e+00> : vector<8x64xf32>
    %162 = tpu.matmul %160, %161, %cst_47 {dimension_numbers = #tpu.dot_dimension_numbers<[1], [0], [0], [1], [0, 0, 1, 1], [], []>} : vector<8x32xbf16>, vector<32x64xbf16>, vector<8x64xf32> -> vector<8x64xf32>
    %c0_48 = arith.constant 0 : index
    %c0_49 = arith.constant 0 : index
    %163 = vector.load %arg11[%c0_48, %c0_49] : memref<1x64xf32, #tpu.memory_space<vmem>>, vector<1x64xf32>
    %164 = vector.broadcast %163 : vector<1x64xf32> to vector<8x64xf32>
    %165 = arith.addf %162, %164 : vector<8x64xf32>
    %cst_50 = arith.constant 5.000000e-01 : f32
    %166 = vector.broadcast %cst_50 : f32 to vector<8x64xf32>
    %167 = arith.mulf %166, %165 : vector<8x64xf32>
    %cst_51 = arith.constant 0.707106769 : f32
    %168 = vector.broadcast %cst_51 : f32 to vector<8x64xf32>
    %169 = arith.mulf %165, %168 : vector<8x64xf32>
    %170 = math.erf %169 : vector<8x64xf32>
    %cst_52 = arith.constant 1.000000e+00 : f32
    %171 = vector.broadcast %cst_52 : f32 to vector<8x64xf32>
    %172 = arith.addf %171, %170 : vector<8x64xf32>
    %173 = arith.mulf %167, %172 : vector<8x64xf32>
    %174 = arith.truncf %173 : vector<8x64xf32> to vector<8x64xbf16>
    %c0_53 = arith.constant 0 : index
    %c0_54 = arith.constant 0 : index
    %175 = vector.load %arg12[%c0_53, %c0_54] : memref<64x32xbf16, #tpu.memory_space<vmem>>, vector<64x32xbf16>
    %cst_55 = arith.constant dense<0.000000e+00> : vector<8x32xf32>
    %176 = tpu.matmul %174, %175, %cst_55 {dimension_numbers = #tpu.dot_dimension_numbers<[1], [0], [0], [1], [0, 0, 1, 1], [], []>} : vector<8x64xbf16>, vector<64x32xbf16>, vector<8x32xf32> -> vector<8x32xf32>
    %c0_56 = arith.constant 0 : index
    %c0_57 = arith.constant 0 : index
    %177 = vector.load %arg13[%c0_56, %c0_57] : memref<1x32xf32, #tpu.memory_space<vmem>>, vector<1x32xf32>
    %178 = vector.broadcast %177 : vector<1x32xf32> to vector<8x32xf32>
    %179 = arith.addf %176, %178 : vector<8x32xf32>
    %180 = arith.addf %133, %179 : vector<8x32xf32>
    %181 = vector.shape_cast %180 : vector<8x32xf32> to vector<1x8x32xf32>
    %c0_58 = arith.constant 0 : index
    %c0_59 = arith.constant 0 : index
    %c0_60 = arith.constant 0 : index
    %182 = vector.load %arg14[%c0_58, %c0_59, %c0_60] : memref<1x8x32xf32, #tpu.memory_space<vmem>>, vector<1x8x32xf32>
    tpu.vector_store %arg14[%c0_58, %c0_59, %c0_60], %181 {strides = array<i32>} : memref<1x8x32xf32, #tpu.memory_space<vmem>>, vector<1x8x32xf32>,
    return
  }
  func.func @transform_0(%arg0: i32) -> (i32, i32, i32) {
    %c0_i32 = arith.constant 0 : i32
    %c0_i32_0 = arith.constant 0 : i32
    %c0_i32_1 = arith.constant 0 : i32
    return %arg0, %c0_i32, %c0_i32_0 : i32, i32, i32
  }
  func.func @transform_1(%arg0: i32) -> (i32, i32) {
    %c0_i32 = arith.constant 0 : i32
    %c0_i32_0 = arith.constant 0 : i32
    %c0_i32_1 = arith.constant 0 : i32
    return %c0_i32, %c0_i32_0 : i32, i32
  }
  func.func @transform_2(%arg0: i32) -> (i32, i32) {
    %c0_i32 = arith.constant 0 : i32
    %c0_i32_0 = arith.constant 0 : i32
    %c0_i32_1 = arith.constant 0 : i32
    return %c0_i32, %c0_i32_0 : i32, i32
  }
  func.func @transform_3(%arg0: i32) -> (i32, i32) {
    %c0_i32 = arith.constant 0 : i32
    %c0_i32_0 = arith.constant 0 : i32
    %c0_i32_1 = arith.constant 0 : i32
    return %c0_i32, %c0_i32_0 : i32, i32
  }
  func.func @transform_4(%arg0: i32) -> (i32, i32) {
    %c0_i32 = arith.constant 0 : i32
    %c0_i32_0 = arith.constant 0 : i32
    %c0_i32_1 = arith.constant 0 : i32
    return %c0_i32, %c0_i32_0 : i32, i32
  }
  func.func @transform_5(%arg0: i32) -> (i32, i32) {
    %c0_i32 = arith.constant 0 : i32
    %c0_i32_0 = arith.constant 0 : i32
    %c0_i32_1 = arith.constant 0 : i32
    return %c0_i32, %c0_i32_0 : i32, i32
  }
  func.func @transform_6(%arg0: i32) -> (i32, i32) {
    %c0_i32 = arith.constant 0 : i32
    %c0_i32_0 = arith.constant 0 : i32
    %c0_i32_1 = arith.constant 0 : i32
    return %c0_i32, %c0_i32_0 : i32, i32
  }
  func.func @transform_7(%arg0: i32) -> (i32, i32) {
    %c0_i32 = arith.constant 0 : i32
    %c0_i32_0 = arith.constant 0 : i32
    %c0_i32_1 = arith.constant 0 : i32
    return %c0_i32, %c0_i32_0 : i32, i32
  }
  func.func @transform_8(%arg0: i32) -> (i32, i32) {
    %c0_i32 = arith.constant 0 : i32
    %c0_i32_0 = arith.constant 0 : i32
    %c0_i32_1 = arith.constant 0 : i32
    return %c0_i32, %c0_i32_0 : i32, i32
  }
  func.func @transform_9(%arg0: i32) -> (i32, i32) {
    %c0_i32 = arith.constant 0 : i32
    %c0_i32_0 = arith.constant 0 : i32
    %c0_i32_1 = arith.constant 0 : i32
    return %c0_i32, %c0_i32_0 : i32, i32
  }
  func.func @transform_10(%arg0: i32) -> (i32, i32) {
    %c0_i32 = arith.constant 0 : i32
    %c0_i32_0 = arith.constant 0 : i32
    %c0_i32_1 = arith.constant 0 : i32
    return %c0_i32, %c0_i32_0 : i32, i32
  }
  func.func @transform_11(%arg0: i32) -> (i32, i32) {
    %c0_i32 = arith.constant 0 : i32
    %c0_i32_0 = arith.constant 0 : i32
    %c0_i32_1 = arith.constant 0 : i32
    return %c0_i32, %c0_i32_0 : i32, i32
  }
  func.func @transform_12(%arg0: i32) -> (i32, i32) {
    %c0_i32 = arith.constant 0 : i32
    %c0_i32_0 = arith.constant 0 : i32
    %c0_i32_1 = arith.constant 0 : i32
    return %c0_i32, %c0_i32_0 : i32, i32
  }
  func.func @transform_13(%arg0: i32) -> (i32, i32, i32) {
    %c0_i32 = arith.constant 0 : i32
    %c0_i32_0 = arith.constant 0 : i32
    %c0_i32_1 = arith.constant 0 : i32
    return %arg0, %c0_i32, %c0_i32_0 : i32, i32, i32
  }
}

</mosaic_0001>

<bundles_post_ra>
// kernel: mul.9
= control target key start
LH: loop header
LB: loop body
LE: loop exit
PB: predicated region body
PF: predicated region fallthrough
CT: control target
= control target key end

     0   :  { %s34_s0 = inlined_call_operand.vmem [shape: f32[1,96], index: 0, kind: input, shape index: {}]   ;;  %s35_s1 = inlined_call_operand.vmem [shape: f32[1,96], index: 1, kind: input, shape index: {}]   ;;  %s36_s2 = inlined_call_operand.vmem [shape: f32[1,96], index: 2, kind: output, shape index: {}]  }
   0x1   :  { %v3_v0 = vld [vmem:[%s34_s0] sm:$0x1] }
   0x2   :  { %v4_v1 = vld [vmem:[%s35_s1] sm:$0x1] }
   0x3   :  { %v7_v2 = vmul.f32 %v4_v1, %v3_v0 }
   0x5   :  { %9 = vst [vmem:[%s36_s2] sm:$0x1] %v7_v2 }

// kernel: lma_block_pallas.1
= control target key start
LH: loop header
LB: loop body
LE: loop exit
PB: predicated region body
PF: predicated region fallthrough
CT: control target
= control target key end

     0   :  { %s1968_s0 = inlined_call_operand.vmem [shape: f32[2,8,32], index: 0, kind: input, shape index: {}]   ;;  %s1969_s1 = inlined_call_operand.vmem [shape: f32[1,32], index: 1, kind: input, shape index: {}]   ;;  %s1970_s2 = inlined_call_operand.vmem [shape: f32[1,32], index: 2, kind: input, shape index: {}]   ;;  %s1971_s3 = inlined_call_operand.vmem [shape: bf16[32,96], index: 3, kind: input, shape index: {}]   ;;  %s1972_s4 = inlined_call_operand.vmem [shape: f32[1,96], index: 4, kind: input, shape index: {}]   ;;  %s1973_s5 = inlined_call_operand.vmem [shape: bf16[32,32], index: 5, kind: input, shape index: {}]   ;;  %s1974_s6 = inlined_call_operand.vmem [shape: f32[1,32], index: 6, kind: input, shape index: {}]   ;;  %s1975_s7 = inlined_call_operand.vmem [shape: f32[1,32], index: 7, kind: input, shape index: {}]   ;;  %s1976_s8 = inlined_call_operand.vmem [shape: f32[1,32], index: 8, kind: input, shape index: {}]   ;;  %s1977_s9 = inlined_call_operand.vmem [shape: bf16[32,64], index: 9, kind: input, shape index: {}]   ;;  %s1978_s10 = inlined_call_operand.vmem [shape: f32[1,64], index: 10, kind: input, shape index: {}]   ;;  %s1979_s11 = inlined_call_operand.vmem [shape: bf16[64,32], index: 11, kind: input, shape index: {}]   ;;  %s1980_s12 = inlined_call_operand.vmem [shape: f32[1,32], index: 12, kind: input, shape index: {}]   ;;  %s1981_s13 = inlined_call_operand.hbm [shape: f32[2,8,32], index: 13, kind: output, shape index: {}]  }
   0x1   :  { %1982 = sst [smem:[#allocation5_spill]] %s1968_s0 }
   0x2   :  { %1983 = sst [smem:[#allocation6_spill]] %s1969_s1 }
   0x3   :  { %1984 = sst [smem:[#allocation7_spill]] %s1970_s2 }
   0x4   :  { %18 = vsyncpa [#allocation3], 0 }
   0x5   :  { %20 = vsyncpa [#allocation3 + $0x1], 0  ;;  %s1715_s25 = smov 0   ;;  %s1717_s26 = smov 0  }
   0x6   :  { %s1719_s27 = smov 0   ;;  %s1721_s28 = smov 0  }
   0x7 LB: > { %s1736_s29 = sadd.s32 4294967295, %s1626_s28   ;;  %s1323_s30 = sadd.s32 4294967294, %s1626_s28   ;;  %s1626_s28 = sphi %s1721_s28, %s1993_s28   ;;  %s1622_s27 = sphi %s1719_s27, %s1992_s27   ;;  %s1618_s26 = sphi %s1717_s26, %s1991_s26   ;;  %s1614_s25 = sphi %s1715_s25, %s1990_s25  }
   0x8   : > { %s1740_s14 = sadd.s32 1, %s1626_s28   ;;  %s311_s15 = sadd.s32 1, %s1622_s27 }
   0x9   : > { %s308_s16 = ssub.s32 %s1626_s28, %s1740_s14  ;;  %p321_p0 = scmp.ne.s32.totalorder %s1622_s27, %s1618_s26 }
   0xa   : > { %p309_p1 = scmp.eq.s32.totalorder %s308_s16, 0  ;;  %p322_p2 = scmp.eq.s32.totalorder %s1736_s29, 1 }
   0xb   : > { %p327_p3 = scmp.ne.s32.totalorder %s1618_s26, %s1614_s25  ;;  %p328_p4 = scmp.eq.s32.totalorder %s1323_s30, 1 }
   0xc   : > { %s1751_s17 = scalar_select %p309_p1, %s1622_s27, %s311_s15  }
   0xd   : > { %p1753_p5 = por %p322_p2, %p321_p0  ;;  %p1757_p6 = por %p328_p4, %p327_p3 }
   0xe   : > { %p1326_p7 = scmp.ge.s32.totalorder %s1626_s28, 1  ;;  %p389_p8 = scmp.lt.s32.totalorder %s1626_s28, 3 }
  0x10   : > { %p390_p9 = pnand %p1326_p7, %p389_p8 }
  0x11   : > { %p432_p10 = scmp.lt.s32.totalorder (!%p390_p9), %s1736_s29, 1  ;;  %vm440_vm0 = vcmask (!%p390_p9), 261120   ;;  %s1987_s0 = sld [smem:[#allocation5_spill]] (!%p390_p9)  ;;  %v1532_v7 = vld [vmem:[%s1971_s3] sm:$0xff] (!%p390_p9)   ;;  %v1628_v8 = vmov (!%p390_p9), 0.0   ;;  %vm1629_vm1 = vmmov (!%p390_p9), 0  }
  0x12   : > { %393 = sbr.rel (%p390_p9) target bundleno = 2597 (0xa25), region = 72  ;;  %1393 = vmatprep.subr.bf16.mxu0 (!%p390_p9), %v1628_v8  ;;  %1397 = vmatprep.mubr.msk.bf16.mxu0 (!%p390_p9), %vm1629_vm1, %v1628_v8  ;;  %v1533_v9 = vld [vmem:[%s1971_s3 + $0x8] sm:$0xff] (!%p390_p9)   ;;  %s1988_s1 = sld [smem:[#allocation6_spill]] (!%p390_p9)  ;;  %v1331_v20 = vld [vmem:[%s1972_s4] ss:$0 sm:$0xff] (!%p390_p9)  ;;  %vm540_vm2 = vcmask (!%p390_p9), 64512  }
  0x13   : > { %1394 = vmatpush3.bf16.msra.mxu0 (!%p390_p9), %v1532_v7  ;;  %1401 = vmatprep.subr.bf16.mxu1 (!%p390_p9), %v1628_v8  ;;  %s1989_s2 = sld [smem:[#allocation7_spill]] (!%p390_p9)  ;;  %s1630_s16 = smov (!%p390_p9), 120   ;;  %vm604_vm3 = vcmask (!%p390_p9), 1043456   ;;  %vm991_vm4 = vcmask (!%p390_p9), 130048   ;;  %vm993_vm5 = vcmask (!%p390_p9), 195584   ;;  %vm1204_vm6 = vcmask (!%p390_p9), 523264  }
  0x14   : > { %1395 = vmatprep.subr.bf16.mxu0 (!%p390_p9), %v1628_v8  ;;  %1403 = vmatprep.mubr.msk.bf16.mxu1 (!%p390_p9), %vm1629_vm1, %v1628_v8  ;;  %s1633_s22 = smov (!%p390_p9), 80   ;;  %s1634_s23 = smov (!%p390_p9), 112  }
  0x15   : > { %s1636_s30 = smov (!%p390_p9), 104   ;;  %s1637_s15 = smov (!%p390_p9), 64  }
  0x17   : > { %1396 = vmatpush3.bf16.msra.mxu0 (!%p390_p9), %v1533_v9 }
  0x18   : > { %1407 = vmatprep.subr.bf16.mxu0 (!%p390_p9), %v1628_v8  ;;  %v1329_v14 = vld [vmem:[%s1988_s1] ss:$0 sm:$0xff] (!%p390_p9) }
  0x19   : > { %s433_s20 = scalar_select %p432_p10, %s1736_s29, 1  ;;  %v1330_v16 = vld [vmem:[%s1989_s2] ss:$0 sm:$0xff] }
  0x1b   : > { %s1328_s21 = sshll.u32 %s433_s20, 3  ;;  %s1631_s20 = smov 96  }
  0x1c   : > { %s435_s24 = scalar_lea.vmem %s1987_s0, %s1328_s21  ;;  %s1632_s21 = smov 88  }
  0x1d   : > { %v1768_v0 = vld [vmem:[%s435_s24] sm:$0xff]  ;;  %s1635_s24 = smov 72  }
  0x1e   : > { %v441_v1 = vsel %vm440_vm0, %v1768_v0, 0.0 }
  0x1f   : > { %442 = vadd.xlane.f32.xlu0 %v441_v1 }
  0xac   : > { %v443_v2 = vpop.xlane.xlu0 %442 }
  0xad   : > { %v445_v3 = vmul.f32 0.03125, %v443_v2 }
  0xaf   : > { %v446_v4 = vsub.f32 %v1768_v0, %v445_v3 }
  0xb1   : > { %v447_v5 = vmul.f32 %v446_v4, %v446_v4 }
  0xb3   : > { %v448_v6 = vsel %vm440_vm0, %v447_v5, 0.0 }
  0xb4   : > { %449 = vadd.xlane.f32.xlu0 %v448_v6 }
 0x141   : > { %v450_v10 = vpop.xlane.xlu0 %449 }
 0x142   : > { %v451_v11 = vmul.f32 0.03125, %v450_v10 }
 0x144   : > { %v452_v12 = vadd.f32 1e-05, %v451_v11 }
 0x146   : > { %1542 = vrsqrt.f32 %v452_v12 }
 0x150   : > { %v1543_v13 = vpop.eup %1542 }
 0x151   : > { %v454_v15 = vmul.f32 %v1543_v13, %v446_v4 }
 0x153   : > { %v461_v17 = vmul.f32 %v1329_v14, %v454_v15 }
 0x155   : > { %v468_v18 = vadd.f32 %v1330_v16, %v461_v17 }
 0x157   : > { %v469_v19 = vpack.c.bf16 %v468_v18, %v468_v18 }
 0x159   : > { %1398 = vmatmul.mubr.msk.bf16.vlgmr.msra.gmra.mrb[0].mxu0 %vm440_vm0, %v469_v19 }
 0x15a   : > { %1409 = vmatprep.mubr.msk.bf16.mxu0 %vm1629_vm1, %v1628_v8 }
 0x22c   : > { %v530_v21 = vpop.f32.mrb[0].mxu0 }
 0x22d   : > { %v531_v22 = vadd.f32 %v1331_v20, %v530_v21  ;;  %v1399_v23 = vpop.f32.mrb[1].mxu0 }
 0x22e   : > { %v533_v24 = vpop.f32.mrb[2].mxu0 }
 0x22f   : > { %v1800_v25 = vpack.c.bf16 %v531_v22, %v531_v22  ;;  %v1400_v26 = vpop.f32.mrb[3].mxu0 }
 0x231   : > { %648 = vrot.lane.b32.xlu0 %v1800_v25, %s1630_s16  ;;  %538 = vrot.lane.b32.xlu1 %v1800_v25, %s1631_s20  ;;  %s1638_s16 = smov 56   ;;  %s1639_s20 = smov 48  }
 0x235   : > { %650 = vrot.lane.b32.xlu1 %v1800_v25, %s1632_s21  ;;  %s1640_s21 = smov 40  }
 0x239   : > { %760 = vrot.lane.b32.xlu1 %v1800_v25, %s1633_s22  ;;  %s1641_s22 = smov 8  }
 0x23d   : > { %758 = vrot.lane.b32.xlu1 %v1800_v25, %s1634_s23 }
 0x241   : > { %870 = vrot.lane.b32.xlu1 %v1800_v25, %s1635_s24 }
 0x245   : > { %868 = vrot.lane.b32.xlu1 %v1800_v25, %s1636_s30  ;;  %s429_s30 = sand.u32 1, %s1618_s26  }
 0x2a3   : > { %v539_v27 = vpop.permute.xlu1 %538  ;;  %v649_v32 = vpop.permute.xlu0 %648 }
 0x2a4   : > { %v545_v28 = vsel %vm540_vm2, %v539_v27, 0 }
 0x2a5   : > { %1402 = vmatpush3.bf16.xpose.msra.mxu1 %v545_v28 }
 0x2a6   : > { %1413 = vmatprep.subr.bf16.mxu1 %v1628_v8 }
 0x2a7   : > { %v651_v29 = vpop.permute.xlu1 %650 }
 0x2a8   : > { %v656_v30 = vsel %vm540_vm2, %v651_v29, 0 }
 0x2ab   : > { %v761_v31 = vpop.permute.xlu1 %760 }
 0x2ac   : > { %1404 = vmatmul.mubr.msk.bf16.vlgmr.msra.gmra.mrb[0].mxu1 %vm540_vm2, %v1800_v25  ;;  %v766_v34 = vsel %vm540_vm2, %v761_v31, 0 }
 0x2ad   : > { %1414 = vmatpush3.bf16.xpose.msra.mxu1 %v656_v30  ;;  %1415 = vmatprep.mubr.msk.bf16.mxu1 %vm1629_vm1, %v1628_v8 }
 0x2ae   : > { %1425 = vmatprep.subr.bf16.mxu1 %v1628_v8 }
 0x2af   : > { %v759_v33 = vpop.permute.xlu1 %758 }
 0x2b3   : > { %v871_v35 = vpop.permute.xlu1 %870 }
 0x2b4   : > { %1416 = vmatmul.mubr.msk.bf16.vlgmr.msra.gmra.mrb[4].mxu1 %vm540_vm2, %v649_v32  ;;  %v876_v36 = vsel %vm540_vm2, %v871_v35, 0 }
 0x2b5   : > { %1426 = vmatpush3.bf16.xpose.msra.mxu1 %v766_v34  ;;  %1427 = vmatprep.mubr.msk.bf16.mxu1 %vm1629_vm1, %v1628_v8 }
 0x2b6   : > { %1437 = vmatprep.subr.bf16.mxu1 %v1628_v8 }
 0x2b7   : > { %v869_v37 = vpop.permute.xlu1 %868 }
 0x2bc   : > { %1428 = vmatmul.mubr.msk.bf16.vlgmr.msra.gmra.mrb[8].mxu1 %vm540_vm2, %v759_v33 }
 0x2bd   : > { %1438 = vmatpush3.bf16.xpose.msra.mxu1 %v876_v36  ;;  %1439 = vmatprep.mubr.msk.bf16.mxu1 %vm1629_vm1, %v1628_v8 }
 0x2be   : > { %1449 = vmatprep.subr.bf16.mxu1 %v1628_v8 }
 0x2c4   : > { %1440 = vmatmul.mubr.msk.bf16.vlgmr.msra.gmra.mrb[12].mxu1 %vm540_vm2, %v869_v37 }
 0x2c5   : > { %1453 = vmatprep.mubr.msk.bf16.mxu1 %vm1629_vm1, %v1628_v8 }
 0x37f   : > { %v581_v38 = vpop.f32.mrb[0].mxu1 }
 0x380   : > { %v1405_v39 = vpop.f32.mrb[1].mxu1  ;;  %v587_v40 = vsel %vm540_vm2, %v581_v38, -inf }
 0x381   : > { %588 = vmax.xlane.f32.xlu1 %v587_v40  ;;  %v584_v41 = vpop.f32.mrb[2].mxu1 }
 0x382   : > { %v1406_v42 = vpop.f32.mrb[3].mxu1 }
 0x387   : > { %v692_v43 = vpop.f32.mrb[4].mxu1 }
 0x388   : > { %v1417_v44 = vpop.f32.mrb[5].mxu1  ;;  %v698_v45 = vsel %vm540_vm2, %v692_v43, -inf }
 0x389   : > { %699 = vmax.xlane.f32.xlu0 %v698_v45  ;;  %v695_v46 = vpop.f32.mrb[6].mxu1 }
 0x38a   : > { %v1418_v47 = vpop.f32.mrb[7].mxu1 }
 0x38f   : > { %v802_v48 = vpop.f32.mrb[8].mxu1 }
 0x390   : > { %v1429_v49 = vpop.f32.mrb[9].mxu1  ;;  %v808_v50 = vsel %vm540_vm2, %v802_v48, -inf }
 0x391   : > { %809 = vmax.xlane.f32.xlu1 %v808_v50  ;;  %v805_v51 = vpop.f32.mrb[10].mxu1  ;;  %v1535_v49 = vld [vmem:[%s1973_s5 + $0x8] sm:$0xff]  }
 0x392   : > { %v1430_v52 = vpop.f32.mrb[11].mxu1 }
 0x397   : > { %v912_v53 = vpop.f32.mrb[12].mxu1 }
 0x398   : > { %v1441_v54 = vpop.f32.mrb[13].mxu1  ;;  %v918_v55 = vsel %vm540_vm2, %v912_v53, -inf }
 0x399   : > { %919 = vmax.xlane.f32.xlu0 %v918_v55  ;;  %v915_v56 = vpop.f32.mrb[14].mxu1 }
 0x39a   : > { %v1442_v57 = vpop.f32.mrb[15].mxu1 }
 0x40e   : > { %v589_v58 = vpop.xlane.xlu1 %588 }
 0x40f   : > { %v590_v59 = vsub.f32 %v581_v38, %v589_v58 }
 0x411   : > { %v591_v60 = vmul.f32 1.442695, %v590_v59 }
 0x413   : > { %1544 = vpow2.f32 %v591_v60 }
 0x416   : > { %v700_v61 = vpop.xlane.xlu0 %699 }
 0x417   : > { %v701_v62 = vsub.f32 %v692_v43, %v700_v61 }
 0x419   : > { %v702_v63 = vmul.f32 1.442695, %v701_v62 }
 0x41b   : > { %1546 = vpow2.f32 %v702_v63 }
 0x41d   : > { %v1545_v1 = vpop.eup %1544 }
 0x41e   : > { %v593_v2 = vsel %vm540_vm2, %v1545_v1, 0.0  ;;  %v810_v11 = vpop.xlane.xlu1 %809 }
 0x41f   : > { %594 = vadd.xlane.f32.xlu1 %v593_v2  ;;  %v811_v12 = vsub.f32 %v802_v48, %v810_v11  ;;  %v1534_v48 = vld [vmem:[%s1973_s5] sm:$0xff]  }
 0x420   : > { %1450 = vmatpush3.bf16.msra.mxu1 %v1534_v48  ;;  %v1343_v2 = vld [vmem:[%s1974_s6] ss:$0 sm:$0xff] }
 0x421   : > { %v812_v13 = vmul.f32 1.442695, %v811_v12  ;;  %1451 = vmatprep.subr.bf16.mxu1 %v1628_v8 }
 0x424   : > { %1452 = vmatpush3.bf16.msra.mxu1 %v1535_v49 }
 0x425   : > { %v1547_v3 = vpop.eup %1546  ;;  %1465 = vmatprep.subr.bf16.mxu1 %v1628_v8 }
 0x426   : > { %v920_v4 = vpop.xlane.xlu0 %919  ;;  %v704_v5 = vsel %vm540_vm2, %v1547_v3, 0.0 }
 0x427   : > { %v921_v6 = vsub.f32 %v912_v53, %v920_v4  ;;  %705 = vadd.xlane.f32.xlu0 %v704_v5 }
 0x429   : > { %v922_v7 = vmul.f32 1.442695, %v921_v6 }
 0x42b   : > { %1548 = vpow2.f32 %v922_v7 }
 0x42c   : > { %1550 = vpow2.f32 %v812_v13 }
 0x430   : > { %599 = vrot.lane.b32.xlu1 %v1800_v25, %s1637_s15  ;;  %s1327_s15 = sshll.u32 %s429_s30, 3 }
 0x435   : > { %v1549_v9 = vpop.eup %1548 }
 0x436   : > { %v924_v10 = vsel %vm540_vm2, %v1549_v9, 0.0  ;;  %v1551_v14 = vpop.eup %1550 }
 0x437   : > { %925 = vadd.xlane.f32.xlu0 %v924_v10  ;;  %v814_v15 = vsel %vm540_vm2, %v1551_v14, 0.0 }
 0x44d   : > { %710 = vrot.lane.b32.xlu0 %v1800_v25, %s1638_s16  ;;  %s1642_s16 = smov 16  }
 0x454   : > { %815 = vadd.xlane.f32.xlu1 %v814_v15 }
 0x465   : > { %820 = vrot.lane.b32.xlu1 %v1800_v25, %s1639_s20  ;;  %s1643_s20 = smov 24  }
 0x469   : > { %930 = vrot.lane.b32.xlu1 %v1800_v25, %s1640_s21  ;;  %s1360_s21 = sshll.u32 %s1736_s29, 7  ;;  %s1251_s29 = scalar_lea.sflag [#allocation3], %s429_s30 }
 0x46a   : > { %s1925_s1 = scalar_lea.hbm %s1981_s13, %s1360_s21 }
 0x4ac   : > { %v595_v16 = vpop.xlane.xlu1 %594 }
 0x4ad   : > { %1552 = vrcp.f32 %v595_v16  ;;  %v1536_v16 = vld [vmem:[%s1977_s9] sm:$0xff]  }
 0x4b0   : > { %v600_v17 = vpop.permute.xlu1 %599 }
 0x4b1   : > { %v606_v18 = vsel %vm604_vm3, %v600_v17, 0 }
 0x4b2   : > { %1408 = vmatpush3.bf16.msra.mxu0 %v606_v18 }
 0x4b3   : > { %1419 = vmatprep.subr.bf16.mxu0 %v1628_v8 }
 0x4b4   : > { %v706_v20 = vpop.xlane.xlu0 %705 }
 0x4b5   : > { %1554 = vrcp.f32 %v706_v20 }
 0x4b7   : > { %v1553_v19 = vpop.eup %1552 }
 0x4b8   : > { %v597_v21 = vmul.f32 %v1553_v19, %v1545_v1 }
 0x4ba   : > { %v598_v22 = vpack.c.bf16 %v597_v21, %v597_v21  ;;  %v1347_v21 = vld [vmem:[%s1975_s7] ss:$0 sm:$0xff] }
 0x4bc   : > { %1410 = vmatmul.mubr.msk.bf16.vlgmr.msra.gmra.mrb[4].mxu0 %vm540_vm2, %v598_v22 }
 0x4bd   : > { %1421 = vmatprep.mubr.msk.bf16.mxu0 %vm1629_vm1, %v1628_v8 }
 0x4bf   : > { %v1555_v23 = vpop.eup %1554 }
 0x4c0   : > { %v708_v25 = vmul.f32 %v1555_v23, %v1547_v3  ;;  %v1348_v23 = vld [vmem:[%s1976_s8] ss:$0 sm:$0xff] }
 0x4c2   : > { %v709_v28 = vpack.c.bf16 %v708_v25, %v708_v25 }
 0x4c4   : > { %v926_v24 = vpop.xlane.xlu0 %925 }
 0x4c8   : > { %v711_v26 = vpop.permute.xlu0 %710 }
 0x4c9   : > { %v716_v27 = vsel %vm604_vm3, %v711_v26, 0 }
 0x4ca   : > { %1420 = vmatpush3.bf16.msra.mxu0 %v716_v27  ;;  %v1538_v27 = vld [vmem:[%s1979_s11] sm:$0xff]  }
 0x4cb   : > { %1431 = vmatprep.subr.bf16.mxu0 %v1628_v8 }
 0x4cd   : > { %1422 = vmatmul.mubr.msk.bf16.vlgmr.msra.gmra.mrb[8].mxu0 %vm540_vm2, %v709_v28  ;;  %v1539_v28 = vld [vmem:[%s1979_s11 + $0x8] sm:$0xff]  }
 0x4ce   : > { %1433 = vmatprep.mubr.msk.bf16.mxu0 %vm1629_vm1, %v1628_v8 }
 0x4e1   : > { %v816_v29 = vpop.xlane.xlu1 %815 }
 0x4e2   : > { %1556 = vrcp.f32 %v816_v29  ;;  %v1540_v29 = vld [vmem:[%s1979_s11 + $0x10] sm:$0xff]  }
 0x4e3   : > { %1558 = vrcp.f32 %v926_v24 }
 0x4e5   : > { %v821_v30 = vpop.permute.xlu1 %820 }
 0x4e6   : > { %v826_v31 = vsel %vm604_vm3, %v821_v30, 0  ;;  %v1541_v30 = vld [vmem:[%s1979_s11 + $0x18] sm:$0xff]  }
 0x4e7   : > { %1432 = vmatpush3.bf16.msra.mxu0 %v826_v31  ;;  %v1349_v31 = vld [vmem:[%s1978_s10] ss:$0 sm:$0xff] }
 0x4e8   : > { %1443 = vmatprep.subr.bf16.mxu0 %v1628_v8 }
 0x4e9   : > { %v931_v34 = vpop.permute.xlu1 %930 }
 0x4ea   : > { %v936_v37 = vsel %vm604_vm3, %v931_v34, 0 }
 0x4ec   : > { %v1557_v32 = vpop.eup %1556 }
 0x4ed   : > { %v818_v33 = vmul.f32 %v1557_v32, %v1551_v14  ;;  %v1559_v36 = vpop.eup %1558 }
 0x4ee   : > { %v928_v38 = vmul.f32 %v1559_v36, %v1549_v9 }
 0x4ef   : > { %v819_v35 = vpack.c.bf16 %v818_v33, %v818_v33 }
 0x4f0   : > { %v929_v39 = vpack.c.bf16 %v928_v38, %v928_v38 }
 0x4f1   : > { %1434 = vmatmul.mubr.msk.bf16.vlgmr.msra.gmra.mrb[12].mxu0 %vm540_vm2, %v819_v35 }
 0x4f2   : > { %1444 = vmatpush3.bf16.msra.mxu0 %v936_v37  ;;  %1445 = vmatprep.mubr.msk.bf16.mxu0 %vm1629_vm1, %v1628_v8 }
 0x4f3   : > { %1457 = vmatprep.subr.bf16.mxu0 %v1628_v8 }
 0x4f9   : > { %1446 = vmatmul.mubr.msk.bf16.vlgmr.msra.gmra.mrb[16].mxu0 %vm540_vm2, %v929_v39 }
 0x4fa   : > { %1461 = vmatprep.mubr.msk.bf16.mxu0 %vm1629_vm1, %v1628_v8  ;;  %1458 = vmatpush3.bf16.msra.mxu0 %v1536_v16 }
 0x4fb   : > { %1459 = vmatprep.subr.bf16.mxu0 %v1628_v8 }
 0x58f   : > { %v642_v40 = vpop.f32.mrb[4].mxu0 }
 0x590   : > { %v1411_v41 = vpop.f32.mrb[5].mxu0 }
 0x591   : > { %v645_v42 = vpop.f32.mrb[6].mxu0 }
 0x592   : > { %v1412_v43 = vpop.f32.mrb[7].mxu0  ;;  %v1353_v42 = vld [vmem:[%s1980_s12] ss:$0 sm:$0xff] }
 0x5a0   : > { %v752_v44 = vpop.f32.mrb[8].mxu0 }
 0x5a1   : > { %979 = vrot.lane.b32.xlu0 %v752_v44, %s1641_s22  ;;  %v1423_v45 = vpop.f32.mrb[9].mxu0  ;;  %s431_s22 = scalar_lea.vmem [#allocation2], %s1327_s15 }
 0x5a2   : > { %v755_v46 = vpop.f32.mrb[10].mxu0  ;;  %s1264_s23 = sshll.u32 %s431_s22, 4  ;;  %s1927_s23 = int_to_ptr.vmem [resolvable:$true] %s1264_s23 }
 0x5a3   : > { %v1424_v47 = vpop.f32.mrb[11].mxu0  ;;  %s1564_s15 = scalar_lea.vmem %s1927_s23, 128 }
 0x5a4   : > { %p1565_p11 = scmp.ne.s32.totalorder %s1927_s23, %s1564_s15 }
 0x5a6   : > { %p1566_p12 = pnand %p1565_p11, %p1753_p5 }
 0x5a8   : > { %p1567_p13 = pneg %p1566_p12 }
 0x5c4   : > { %v862_v50 = vpop.f32.mrb[12].mxu0 }
 0x5c5   : > { %983 = vrot.lane.b32.xlu1 %v862_v50, %s1642_s16  ;;  %v1435_v51 = vpop.f32.mrb[13].mxu0  ;;  %s1644_s16 = smov [#allocation2]  }
 0x5c6   : > { %v865_v52 = vpop.f32.mrb[14].mxu0 }
 0x5c7   : > { %v1436_v53 = vpop.f32.mrb[15].mxu0 }
 0x5cc   : > { %v972_v54 = vpop.f32.mrb[16].mxu0 }
 0x5cd   : > { %987 = vrot.lane.b32.xlu0 %v972_v54, %s1643_s20  ;;  %v1447_v55 = vpop.f32.mrb[17].mxu0  ;;  %s1568_s20 = sshll.u32 %s1644_s16, 4  ;;  %s1569_s20 = int_to_ptr.vmem [resolvable:$false] %s1568_s20 }
 0x5ce   : > { %v975_v56 = vpop.f32.mrb[18].mxu0  ;;  %s1570_s2 = scalar_lea.vmem %s1569_s20, 256  ;;  %p1571_p0 = scmp.lt.s32.totalorder %s1927_s23, %s1569_s20 }
 0x5cf   : > { %v1448_v57 = vpop.f32.mrb[19].mxu0  ;;  %p1572_p1 = scmp.lt.s32.totalorder %s1570_s2, %s1564_s15 }
 0x5d1   : > { %p1573_p2 = por %p1572_p1, %p1571_p0 }
 0x5d3   : > { %p1574_p3 = pnand %p1573_p2, %p1567_p13 }
 0x613   : > { %v980_v58 = vpop.permute.xlu0 %979 }
 0x614   : > { %v990_v60 = vsel %vm540_vm2, %v642_v40, %v980_v58 }
 0x637   : > { %v984_v59 = vpop.permute.xlu1 %983 }
 0x638   : > { %v992_v61 = vsel %vm991_vm4, %v990_v60, %v984_v59 }
 0x63f   : > { %v988_v62 = vpop.permute.xlu0 %987 }
 0x640   : > { %v994_v63 = vsel %vm993_vm5, %v992_v61, %v988_v62 }
 0x641   : > { %v995_v1 = vpack.c.bf16 %v994_v63, %v994_v63 }
 0x643   : > { %1454 = vmatmul.mubr.msk.bf16.vlgmr.msra.gmra.mrb[16].mxu1 %vm440_vm0, %v995_v1 }
 0x644   : > { %1473 = vmatprep.mubr.msk.bf16.mxu1 %vm1629_vm1, %v1628_v8  ;;  %1466 = vmatpush3.bf16.msra.mxu1 %v1538_v27 }
 0x645   : > { %1467 = vmatprep.subr.bf16.mxu1 %v1628_v8 }
 0x648   : > { %1468 = vmatpush3.bf16.msra.mxu1 %v1539_v28 }
 0x649   : > { %1469 = vmatprep.subr.bf16.mxu1 %v1628_v8 }
 0x64c   : > { %1470 = vmatpush3.bf16.msra.mxu1 %v1540_v29 }
 0x64d   : > { %1471 = vmatprep.subr.bf16.mxu1 %v1628_v8 }
 0x650   : > { %1472 = vmatpush3.bf16.msra.mxu1 %v1541_v30 }
 0x716   : > { %v1056_v3 = vpop.f32.mrb[16].mxu1 }
 0x717   : > { %v1057_v4 = vadd.f32 %v1343_v2, %v1056_v3  ;;  %v1455_v5 = vpop.f32.mrb[17].mxu1 }
 0x718   : > { %v1059_v6 = vpop.f32.mrb[18].mxu1 }
 0x719   : > { %v1878_v7 = vadd.f32 %v1057_v4, %v1768_v0  ;;  %v1456_v9 = vpop.f32.mrb[19].mxu1  ;;  %v1537_v0 = vld [vmem:[%s1977_s9 + $0x8] sm:$0xff]  }
 0x71a   : > { %1460 = vmatpush3.bf16.msra.mxu0 %v1537_v0 }
 0x71b   : > { %v1065_v10 = vsel %vm440_vm0, %v1878_v7, 0.0 }
 0x71c   : > { %1066 = vadd.xlane.f32.xlu1 %v1065_v10 }
 0x7a9   : > { %v1067_v11 = vpop.xlane.xlu1 %1066 }
 0x7aa   : > { %v1068_v12 = vmul.f32 0.03125, %v1067_v11 }
 0x7ac   : > { %v1069_v13 = vsub.f32 %v1878_v7, %v1068_v12 }
 0x7ae   : > { %v1070_v14 = vmul.f32 %v1069_v13, %v1069_v13 }
 0x7b0   : > { %v1071_v15 = vsel %vm440_vm0, %v1070_v14, 0.0 }
 0x7b1   : > { %1072 = vadd.xlane.f32.xlu0 %v1071_v15 }
 0x83e   : > { %v1073_v17 = vpop.xlane.xlu0 %1072 }
 0x83f   : > { %v1074_v18 = vmul.f32 0.03125, %v1073_v17 }
 0x841   : > { %v1075_v19 = vadd.f32 1e-05, %v1074_v18 }
 0x843   : > { %1560 = vrsqrt.f32 %v1075_v19 }
 0x84d   : > { %v1561_v20 = vpop.eup %1560 }
 0x84e   : > { %v1077_v22 = vmul.f32 %v1561_v20, %v1069_v13 }
 0x850   : > { %v1084_v24 = vmul.f32 %v1347_v21, %v1077_v22 }
 0x852   : > { %v1091_v25 = vadd.f32 %v1348_v23, %v1084_v24 }
 0x854   : > { %v1092_v26 = vpack.c.bf16 %v1091_v25, %v1091_v25 }
 0x856   : > { %1462 = vmatmul.mubr.msk.bf16.vlgmr.msra.gmra.mrb[20].mxu0 %vm440_vm0, %v1092_v26 }
 0x929   : > { %v1153_v32 = vpop.f32.mrb[20].mxu0 }
 0x92a   : > { %v1154_v33 = vadd.f32 %v1349_v31, %v1153_v32  ;;  %v1463_v34 = vpop.f32.mrb[21].mxu0 }
 0x92b   : > { %v1156_v35 = vpop.f32.mrb[22].mxu0 }
 0x92c   : > { %v1160_v36 = vmul.f32 0.70710677, %v1154_v33  ;;  %v1464_v37 = vpop.f32.mrb[23].mxu0  ;;  %v1159_v8 = vmul.f32 0.5, %v1154_v33 }
 0x92e   : > { %1562 = verf.f32 %v1160_v36 }
 0x938   : > { %v1563_v38 = vpop.eup %1562 }
 0x939   : > { %v1162_v39 = vadd.f32 1.0, %v1563_v38 }
 0x93b   : > { %v1163_v40 = vmul.f32 %v1162_v39, %v1159_v8 }
 0x93d   : > { %v1164_v41 = vpack.c.bf16 %v1163_v40, %v1163_v40 }
 0x93f   : > { %1474 = vmatmul.mubr.msk.bf16.vlgmr.msra.gmra.mrb[20].mxu1 %vm1204_vm6, %v1164_v41 }
 0xa12   : > { %v1242_v43 = vpop.f32.mrb[20].mxu1 }
 0xa13   : > { %v1243_v44 = vadd.f32 %v1353_v42, %v1242_v43  ;;  %v1475_v45 = vpop.f32.mrb[21].mxu1 }
 0xa14   : > { %v1245_v46 = vpop.f32.mrb[22].mxu1 }
 0xa15   : > { %v1248_v47 = vadd.f32 %v1243_v44, %v1878_v7  ;;  %v1476_v48 = vpop.f32.mrb[23].mxu1 }
 0xa17   : > { %1249 = vst.msk [vmem:[%s431_s22] sm:$0xff] %vm440_vm0, %v1248_v47 }
 0xa18   : > { %1577 = shalt.err (!%p1574_p3)
}
 0xa19   : > { %s1578_s0 = scalar_lea.hbm %s1925_s1, 128  ;;  %s1582_s22 = scalar_lea.hbm %s1981_s13, 256 }
 0xa1a   : > { %p1579_p4 = scmp.ne.s32.totalorder %s1925_s1, %s1578_s0  ;;  %p1583_p9 = scmp.lt.u32.totalorder %s1925_s1, %s1981_s13 }
 0xa1b   : > { %p1584_p10 = scmp.lt.u32.totalorder %s1582_s22, %s1578_s0  ;;  %p1586_p12 = scmp.lt.u32.totalorder %s1578_s0, %s1925_s1 }
 0xa1c   : > { %p1580_p7 = pnand %p1579_p4, %p1753_p5 }
 0xa1d   : > { %p1585_p11 = por %p1584_p10, %p1583_p9 }
 0xa1e   : > { %p1581_p8 = pneg %p1580_p7 }
 0xa1f   : > { %p1587_p13 = por %p1586_p12, %p1585_p11 }
 0xa21   : > { %p1588_p0 = pnand %p1587_p13, %p1581_p8 }
 0xa23   : > { %1591 = shalt.err (!%p1588_p0)
}
 0xa24   : > { %1477 = dma.vmem_to_hbm [thread:$0]  (%p1753_p5), %s1927_s23, 128, %s1925_s1, %s1251_s29  }
 0xa25 PF: > { %p1483_p1 = scmp.ge.s32.totalorder %s1626_s28, 2  ;;  %s1276_s2 = sand.u32 1, %s1614_s25  }
 0xa26   : > { %s1277_s15 = scalar_lea.sflag [#allocation3], %s1276_s2 }
 0xa27   : > { %p1480_p2 = pnand %p1483_p1, %p1757_p6 }
 0xa29   : > { %1609 = dma.done.wait (!%p1480_p2), %s1277_s15, 128  }
 0xa2a   : > { %1611 = vsyncadd (!%p1480_p2), %s1277_s15, 4294967168  ;;  %p23_p3 = scmp.ge.s32.totalorder %s1740_s14, 4   ;;  %s1990_s25 = smov %s1618_s26 }
 0xa2b   : > { %s1991_s26 = smov %s1622_s27  ;;  %s1992_s27 = smov %s1751_s17 }
 0xa2c   : > { %s1993_s28 = smov %s1740_s14  ;;  %25 = sbr.rel (!%p23_p3) target bundleno = 7 (0x7), region = 107 }
 0xa33   :  { %1282 = vsyncpa [#allocation3], 1 }
 0xa34   :  { %1284 = vsyncpa [#allocation3 + $0x1], 1 }

</bundles_post_ra>
